<compile_context>
chip_gen: v7x
topology: tpu7x:2x2x1
jax: 0.10.0
libtpu: 0.0.40
codegen_flags: <defaults>
</compile_context>

<pallas_src>
import jax
import jax.numpy as jnp
from jax.experimental import pallas as pl
from jax.experimental.pallas import tpu as pltpu

_LANE_CHUNK = 1024  # in-kernel lane sub-tile (multiple of 128)


def _mlp_kernel(x_ref, params_ref, b2_ref, o_ref):
    # x_ref     : (1, TN)   lane-dense batch block
    # params_ref: (3, H, 1) stacked [w1, b1, w2] columns, resident in VMEM
    # b2_ref    : (1,)      capa_oculta.bias, scalar in SMEM
    # o_ref     : (1, TN)
    w1 = params_ref[0]          # (H, 1)
    b1 = params_ref[1]          # (H, 1)
    w2 = params_ref[2]          # (H, 1)
    b2 = b2_ref[0]

    tn = x_ref.shape[-1]
    chunk = min(_LANE_CHUNK, tn)
    # Static (fully unrolled at trace time) loop over lane sub-tiles: the
    # (H, chunk) hidden intermediate stays small no matter how large TN is.
    for off in range(0, tn, chunk):
        cs = min(chunk, tn - off)
        xc = x_ref[:, off:off + cs]                          # (1, cs)
        # Hidden layer: VPU broadcast outer product + bias + ReLU -> (H, cs)
        hc = jnp.maximum(w1 * xc + b1, 0.0)
        # Output layer: weight, reduce over hidden units (sublane axis), + bias
        yc = jnp.sum(hc * w2, axis=0, keepdims=True) + b2    # (1, cs)
        o_ref[:, off:off + cs] = yc.astype(o_ref.dtype)


def red_neuronal_forward(x, w1, b1, w2, b2, *, block_n=16384):
    """Forward pass of RedNeuronal with PyTorch-convention parameters.

    x  : (N, 1) float32
    w1 : (H, 1) float32  == capa_entrada.weight
    b1 : (H,)   float32  == capa_entrada.bias
    w2 : (1, H) float32  == capa_oculta.weight
    b2 : (1,)   float32  == capa_oculta.bias
    returns (N, 1) float32
    """
    n = x.shape[0]
    h = w1.shape[0]

    # ---- free layout plumbing: batch onto the lane axis, pack the weights ----
    x_row = x.reshape(1, n)
    params = jnp.stack([w1, b1.reshape(h, 1), w2.reshape(h, 1)], axis=0)  # (3, H, 1)

    # ---- generation-aware VMEM budget ----
    try:
        vmem_cap = int(pltpu.get_tpu_info().vmem_capacity_bytes)
    except Exception:
        vmem_cap = 64 << 20                      # conservative (v7x per-TC VMEM)
    usable = max(8 << 20, vmem_cap // 2)         # leave headroom for the compiler

    f32 = 4
    h_pad = max(8, ((h + 7) // 8) * 8)
    chunk = min(_LANE_CHUNK, max(128, 128 * (max(block_n, 128) // 128)))
    fixed_bytes = f32 * (2 * 3 * h_pad * 128     # params tile, lane-padded, x2 buffers
                         + 4 * h_pad * chunk)    # in-kernel (H, chunk) temporaries (generous)
    per_lane_bytes = f32 * 2 * 2 * 8             # x + out blocks, x2 buffers, 8-sublane padded
    tn_cap = max(128, ((usable - fixed_bytes) // per_lane_bytes) // 128 * 128)

    # ---- batch tile selection ----
    n_groups = pl.cdiv(n, 128)                   # number of 128-lane groups
    if n_groups <= 1:
        tn = n                                   # single full-width block (block == array dim)
    else:
        tn = max(128, 128 * (block_n // 128))    # defensive 128-alignment of caller tile
        tn = min(tn, tn_cap, 128 * n_groups)
        if tn >= 128 * n_groups:
            # Whole batch fits in one tile: split in two so both v7x TensorCores
            # get work (harmless on single-core v5e/v6e).
            tn = 128 * ((n_groups + 1) // 2)
    grid = (pl.cdiv(n, tn),)

    block_bytes = per_lane_bytes * tn + fixed_bytes
    vmem_limit = int(min(usable, max(8 << 20, 2 * block_bytes)))

    out = pl.pallas_call(
        _mlp_kernel,
        out_shape=jax.ShapeDtypeStruct((1, n), x.dtype),
        grid=grid,
        in_specs=[
            pl.BlockSpec((1, tn), lambda i: (0, i)),          # x: blocked over batch lanes
            pl.BlockSpec((3, h, 1), lambda i: (0, 0, 0)),     # packed [w1,b1,w2]: resident
            pl.BlockSpec(memory_space=pltpu.MemorySpace.SMEM),  # b2 scalar
        ],
        out_specs=pl.BlockSpec((1, tn), lambda i: (0, i)),
        compiler_params=pltpu.CompilerParams(
            dimension_semantics=("parallel",),
            vmem_limit_bytes=vmem_limit,
        ),
    )(x_row, params, b2)

    # (1, N) -> (N, 1) is a free reshape; no padding was added, so no slice-copy.
    return out.reshape(n, 1)


def init_params(key, neuronas_ocultas):
    """PyTorch nn.Linear default init (U[-1/sqrt(fan_in), +]), PyTorch shapes."""
    k1, k2, k3, k4 = jax.random.split(key, 4)
    h = neuronas_ocultas
    bound1 = 1.0                                   # fan_in = 1
    bound2 = 1.0 / jnp.sqrt(float(h))              # fan_in = H
    w1 = jax.random.uniform(k1, (h, 1), jnp.float32, -bound1, bound1)
    b1 = jax.random.uniform(k2, (h,), jnp.float32, -bound1, bound1)
    w2 = jax.random.uniform(k3, (1, h), jnp.float32, -bound2, bound2)
    b2 = jax.random.uniform(k4, (1,), jnp.float32, -bound2, bound2)
    return w1, b1, w2, b2


def _reference(x, w1, b1, w2, b2):
    # Same math as the PyTorch module (nn.Linear: x @ W.T + b).
    return jnp.maximum(x @ w1.T + b1, 0.0) @ w2.T + b2


if __name__ == "__main__":
    key = jax.random.PRNGKey(0)
    kx, kp = jax.random.split(key)

    H = 32  # neuronas_ocultas
    w1, b1, w2, b2 = init_params(kp, H)

    # Small case (matches the original script's tiny batch): single block.
    x_small = jax.random.uniform(kx, (8, 1), jnp.float32, -1.0, 1.0)
    out_small = jax.block_until_ready(red_neuronal_forward(x_small, w1, b1, w2, b2))
    ref_small = _reference(x_small, w1, b1, w2, b2)
    assert out_small.shape == (8, 1)
    assert jnp.allclose(out_small, ref_small, atol=1e-5, rtol=1e-5)

    # Larger batch: exercises multi-block grid, ragged last block, megacore split.
    x_big = jax.random.uniform(kx, (1000, 1), jnp.float32, -1.0, 1.0)
    out_big = jax.block_until_ready(red_neuronal_forward(x_big, w1, b1, w2, b2))
    ref_big = _reference(x_big, w1, b1, w2, b2)
    assert out_big.shape == (1000, 1)
    assert jnp.allclose(out_big, ref_big, atol=1e-5, rtol=1e-5)

    print("KERNEL_OK")
</pallas_src>

<mosaic_0001>
module attributes {stable_mosaic.version = 11 : i64} {
  func.func @_mlp_kernel(%arg0: i32, %arg1: memref<1x8xf32, #tpu.memory_space<vmem>>, %arg2: memref<3x32x1xf32, #tpu.memory_space<vmem>>, %arg3: memref<1xf32, #tpu.memory_space<smem>>, %arg4: memref<1x8xf32, #tpu.memory_space<vmem>>) attributes {dimension_semantics = [#tpu.dimension_semantics<parallel>], iteration_bounds = array<i64: 1>, scalar_prefetch = 0 : i64, scratch_operands = 0 : i64, tpu.core_type = #tpu.core_type<tc>, window_params = [{transform_indices = @transform_0, window_bounds = array<i64: 1, 8>}, {pipeline_mode = #tpu.pipeline_mode<synchronous>, transform_indices = @transform_1, window_bounds = array<i64: 3, 32, 1>}, {transform_indices = @transform_2, window_bounds = array<i64: 1>}, {transform_indices = @transform_3, window_bounds = array<i64: 1, 8>}]} {
    %c0 = arith.constant 0 : index
    %c0_0 = arith.constant 0 : index
    %c0_1 = arith.constant 0 : index
    %0 = vector.load %arg2[%c0, %c0_0, %c0_1] : memref<3x32x1xf32, #tpu.memory_space<vmem>>, vector<1x32x1xf32>
    %1 = vector.shape_cast %0 : vector<1x32x1xf32> to vector<32x1xf32>
    %c1 = arith.constant 1 : index
    %c0_2 = arith.constant 0 : index
    %c0_3 = arith.constant 0 : index
    %2 = vector.load %arg2[%c1, %c0_2, %c0_3] : memref<3x32x1xf32, #tpu.memory_space<vmem>>, vector<1x32x1xf32>
    %3 = vector.shape_cast %2 : vector<1x32x1xf32> to vector<32x1xf32>
    %c2 = arith.constant 2 : index
    %c0_4 = arith.constant 0 : index
    %c0_5 = arith.constant 0 : index
    %4 = vector.load %arg2[%c2, %c0_4, %c0_5] : memref<3x32x1xf32, #tpu.memory_space<vmem>>, vector<1x32x1xf32>
    %5 = vector.shape_cast %4 : vector<1x32x1xf32> to vector<32x1xf32>
    %c0_6 = arith.constant 0 : index
    %6 = memref.load %arg3[%c0_6] : memref<1xf32, #tpu.memory_space<smem>>
    %c0_7 = arith.constant 0 : index
    %c0_8 = arith.constant 0 : index
    %7 = vector.load %arg1[%c0_7, %c0_8] : memref<1x8xf32, #tpu.memory_space<vmem>>, vector<1x8xf32>
    %8 = vector.broadcast %1 : vector<32x1xf32> to vector<32x8xf32>
    %9 = vector.broadcast %7 : vector<1x8xf32> to vector<32x8xf32>
    %10 = arith.mulf %8, %9 : vector<32x8xf32>
    %11 = vector.broadcast %3 : vector<32x1xf32> to vector<32x8xf32>
    %12 = arith.addf %10, %11 : vector<32x8xf32>
    %cst = arith.constant 0.000000e+00 : f32
    %13 = vector.broadcast %cst : f32 to vector<32x8xf32>
    %14 = arith.maximumf %12, %13 : vector<32x8xf32>
    %15 = vector.broadcast %5 : vector<32x1xf32> to vector<32x8xf32>
    %16 = arith.mulf %14, %15 : vector<32x8xf32>
    %cst_9 = arith.constant dense<0.000000e+00> : vector<8xf32>
    %17 = vector.multi_reduction <add>, %16, %cst_9 [0] : vector<32x8xf32> to vector<8xf32>
    %18 = vector.shape_cast %17 : vector<8xf32> to vector<1x8xf32>
    %19 = vector.broadcast %6 : f32 to vector<1x8xf32>
    %20 = arith.addf %18, %19 : vector<1x8xf32>
    %c0_10 = arith.constant 0 : index
    %c0_11 = arith.constant 0 : index
    %21 = vector.load %arg4[%c0_10, %c0_11] : memref<1x8xf32, #tpu.memory_space<vmem>>, vector<1x8xf32>
    tpu.vector_store %arg4[%c0_10, %c0_11], %20 {strides = array<i32>} : memref<1x8xf32, #tpu.memory_space<vmem>>, vector<1x8xf32>,
    return
  }
  func.func @transform_0(%arg0: i32) -> (i32, i32) {
    %c0_i32 = arith.constant 0 : i32
    %c0_i32_0 = arith.constant 0 : i32
    return %c0_i32, %arg0 : i32, i32
  }
  func.func @transform_1(%arg0: i32) -> (i32, i32, i32) {
    %c0_i32 = arith.constant 0 : i32
    %c0_i32_0 = arith.constant 0 : i32
    %c0_i32_1 = arith.constant 0 : i32
    %c0_i32_2 = arith.constant 0 : i32
    return %c0_i32, %c0_i32_0, %c0_i32_1 : i32, i32, i32
  }
  func.func @transform_2(%arg0: i32) -> i32 {
    %c0_i32 = arith.constant 0 : i32
    %c0_i32_0 = arith.constant 0 : i32
    return %c0_i32 : i32
  }
  func.func @transform_3(%arg0: i32) -> (i32, i32) {
    %c0_i32 = arith.constant 0 : i32
    %c0_i32_0 = arith.constant 0 : i32
    return %c0_i32, %arg0 : i32, i32
  }
}

</mosaic_0001>

<bundles_post_ra>
// kernel: tpu_custom_call.1
= control target key start
LH: loop header
LB: loop body
LE: loop exit
PB: predicated region body
PF: predicated region fallthrough
CT: control target
= control target key end

     0   :  { %v183_v2 = vmov 0   ;;  %s263_s0 = inlined_call_operand.vmem [shape: f32[1,8], index: 0, kind: input, shape index: {}]   ;;  %s264_s1 = inlined_call_operand.vmem [shape: f32[3,32,1], index: 1, kind: input, shape index: {}]   ;;  %s265_s2 = inlined_call_operand.<no memory space> [shape: f32[1], index: 2, kind: input, shape index: {}]   ;;  %s266_s3 = inlined_call_operand.hbm [shape: f32[1,8], index: 3, kind: output, shape index: {}]  }
   0x1   :  { %v18_v0 = vld [vmem:[%s264_s1 + $0x10] sm:$0xff]  ;;  %v16_v1 = vld [vmem:[%s264_s1] sm:$0xff]  ;;  %158 = vset.pattern.permute.xlu1 %v183_v2  ;;  %157 = vset.pattern.permute.xlu0 %v183_v2  ;;  %v17_v4 = vld [vmem:[%s264_s1 + $0x8] sm:$0xff] }
   0x2   :  { %44 = vperm.xlu1 %158, %v18_v0   ;;  %34 = vperm.xlu0 %157, %v16_v1   ;;  %v146_v3 = vld [vmem:[%s264_s1 + $0x20] sm:$0xff] }
   0x3   :  { %9 = vsyncpa [#allocation4], 0  ;;  %v19_v5 = vld [vmem:[%s264_s1 + $0x18] sm:$0xff]  ;;  %v147_v6 = vld [vmem:[%s264_s1 + $0x28] sm:$0xff]  ;;  %vm114_vm0 = vcmask 64512   ;;  %v128_v54 = vstv %s265_s2  ;;  %s184_s11 = smov [#allocation3]  }
   0x4   :  { %v149_v7 = vld [vmem:[%s264_s1 + $0x38] sm:$0xff]  ;;  %v148_v8 = vld [vmem:[%s264_s1 + $0x30] sm:$0xff]  ;;  %v151_v9 = vld [vmem:[%s264_s1 + $0x48] sm:$0xff]  ;;  %s138_s12 = sshll.u32 %s184_s11, 4  ;;  %vm130_vm1 = vcmask 57344   ;;  %s139_s12 = int_to_ptr.vmem [resolvable:$true] %s138_s12 }
   0x5   :  { %v150_v10 = vld [vmem:[%s264_s1 + $0x40] sm:$0xff]  ;;  %v153_v11 = vld [vmem:[%s264_s1 + $0x58] sm:$0xff]  ;;  %v152_v12 = vld [vmem:[%s264_s1 + $0x50] sm:$0xff]  ;;  %s159_s13 = scalar_lea.vmem %s139_s12, 16  ;;  %s163_s14 = scalar_lea.vmem %s139_s12, 32 }
   0x6   :  { %64 = vperm.xlu1 %158, %v146_v3   ;;  %39 = vperm.xlu0 %157, %v17_v4   ;;  %v154_v17 = vld [vmem:[%s263_s0] ss:$0 sm:$0xff]  ;;  %p160_p0 = scmp.ne.s32.totalorder %s139_s12, %s159_s13  ;;  %p164_p1 = scmp.lt.s32.totalorder %s139_s12, %s139_s12 }
   0x7   :  { %p165_p2 = scmp.lt.s32.totalorder %s163_s14, %s159_s13 }
   0x9   :  { %p166_p3 = por %p165_p2, %p164_p1 }
   0xa   :  { %49 = vperm.xlu1 %158, %v19_v5   ;;  %69 = vperm.xlu0 %157, %v147_v6  }
   0xb   :  { %p167_p4 = pnand %p166_p3, %p160_p0 }
   0xe   :  { %79 = vperm.xlu1 %158, %v149_v7   ;;  %74 = vperm.xlu0 %157, %v148_v8  }
  0x12   :  { %97 = vperm.xlu1 %158, %v151_v9   ;;  %92 = vperm.xlu0 %157, %v150_v10  }
  0x16   :  { %107 = vperm.xlu1 %158, %v153_v11   ;;  %102 = vperm.xlu0 %157, %v152_v12  }
  0x81   :  { %v45_v13 = vpop.permute.xlu1 %44  ;;  %v35_v14 = vpop.permute.xlu0 %34 }
  0x82   :  { %v58_v20 = vmul.f32 %v154_v17, %v35_v14  ;;  %v60_v26 = vmul.f32 %v154_v17, %v45_v13 }
  0x85   :  { %v65_v15 = vpop.permute.xlu1 %64  ;;  %v40_v16 = vpop.permute.xlu0 %39 }
  0x86   :  { %v59_v21 = vmul.f32 %v154_v17, %v40_v16  ;;  %v82_v22 = vadd.f32 %v65_v15, %v58_v20 }
  0x88   :  { %v86_v28 = vmax.f32 %v82_v22, 0.0 }
  0x89   :  { %v50_v18 = vpop.permute.xlu1 %49  ;;  %v70_v19 = vpop.permute.xlu0 %69 }
  0x8a   :  { %v83_v23 = vadd.f32 %v70_v19, %v59_v21  ;;  %v61_v27 = vmul.f32 %v154_v17, %v50_v18 }
  0x8c   :  { %v87_v29 = vmax.f32 %v83_v23, 0.0 }
  0x8d   :  { %v80_v24 = vpop.permute.xlu1 %79  ;;  %v75_v25 = vpop.permute.xlu0 %74 }
  0x8e   :  { %v85_v30 = vadd.f32 %v80_v24, %v61_v27  ;;  %v84_v31 = vadd.f32 %v75_v25, %v60_v26 }
  0x90   :  { %v89_v36 = vmax.f32 %v85_v30, 0.0  ;;  %v88_v37 = vmax.f32 %v84_v31, 0.0 }
  0x91   :  { %v98_v32 = vpop.permute.xlu1 %97  ;;  %v93_v33 = vpop.permute.xlu0 %92 }
  0x92   :  { %v111_v34 = vmul.f32 %v98_v32, %v87_v29  ;;  %v110_v35 = vmul.f32 %v93_v33, %v86_v28 }
  0x94   :  { %v116_v38 = vsel %vm114_vm0, %v111_v34, 0.0  ;;  %v115_v39 = vsel %vm114_vm0, %v110_v35, 0.0 }
  0x95   :  { %v108_v40 = vpop.permute.xlu1 %107  ;;  %v103_v41 = vpop.permute.xlu0 %102  ;;  %v117_v44 = vadd.f32 %v116_v38, %v115_v39 }
  0x96   :  { %v113_v42 = vmul.f32 %v108_v40, %v89_v36  ;;  %v112_v43 = vmul.f32 %v103_v41, %v88_v37 }
  0x98   :  { %v118_v45 = vsel %vm114_vm0, %v112_v43, 0.0  ;;  %v120_v47 = vsel %vm114_vm0, %v113_v42, 0.0 }
  0x99   :  { %v119_v46 = vadd.f32 %v118_v45, %v117_v44 }
  0x9b   :  { %v121_v48 = vadd.f32 %v120_v47, %v119_v46 }
  0x9d   :  { %v122_v49 = vrot.slane %v121_v48, 4 }
  0x9f   :  { %v123_v50 = vadd.f32 %v122_v49, %v121_v48 }
  0xa1   :  { %v124_v51 = vrot.slane %v123_v50, 2 }
  0xa3   :  { %v125_v52 = vadd.f32 %v124_v51, %v123_v50 }
  0xa5   :  { %v126_v53 = vrot.slane %v125_v52, 1 }
  0xa7   :  { %v127_v55 = vadd.f32 %v126_v53, %v125_v52 }
  0xa9   :  { %v129_v56 = vadd.f32 %v128_v54, %v127_v55 }
  0xab   :  { %131 = vst.msk [vmem:[#allocation3] sm:$0x1] %vm130_vm1, %v129_v56 }
  0xac   :  { %170 = shalt.err (!%p167_p4)
}
  0xad   :  { %s171_s17 = scalar_lea.hbm %s266_s3, 16 }
  0xae   :  { %p172_p5 = scmp.ne.s32.totalorder %s266_s3, %s171_s17  ;;  %p175_p6 = scmp.lt.u32.totalorder %s171_s17, %s266_s3 }
  0xb0   :  { %p177_p7 = pnand %p175_p6, %p172_p5 }
  0xb2   :  { %180 = shalt.err (!%p177_p7)
}
  0xb3   :  { %141 = dma.vmem_to_hbm [thread:$0]  %s139_s12, 16, %s266_s3, [#allocation4]  }
  0xb4   :  { %181 = dma.done.wait [#allocation4], 16  }
  0xb5   :  { %182 = vsyncadd [#allocation4], 4294967280 }
  0xb6   :  { %145 = vsyncpa [#allocation4], 1 }

</bundles_post_ra>
